<compile_context>
chip_gen: v7x
topology: tpu7x:2x2x1
jax: 0.10.0
libtpu: 0.0.40
codegen_flags: <defaults>
</compile_context>

<pallas_src>
import math
from functools import partial

import jax
import jax.numpy as jnp
from jax.experimental import pallas as pl
from jax.experimental.pallas import tpu as pltpu


def _cdiv(a, b):
    return -(-a // b)


def _round_up(a, b):
    return _cdiv(a, b) * b


def _linear_operator_kernel(emb_ref, wt_ref, out_ref, *, precision):
    # emb_ref: (bm, K)   block of embedding rows (streamed, double-buffered)
    # wt_ref:  (K, tn)   column tile of W^T (resident / single-buffered)
    # out_ref: (bm, tn)
    #
    # out[r, :] = W @ emb[r, :]  ==  (emb @ W^T)[r, :]
    out_ref[...] = jax.lax.dot_general(
        emb_ref[...], wt_ref[...],
        dimension_numbers=(((1,), (0,)), ((), ())),   # standard K-major contraction
        precision=precision,
        preferred_element_type=jnp.float32,
    ).astype(out_ref.dtype)


def linear_operator(embeddings, linear_transformation, *, block_rows=None, precision=None):
    """embeddings: (..., dim); linear_transformation: (dim, dim).

    Returns an array with the same shape/dtype as `embeddings`, with every
    trailing-dim vector v replaced by linear_transformation @ v.
    """
    dim = embeddings.shape[-1]
    if linear_transformation.shape != (dim, dim):
        raise ValueError(
            "linear_transformation must be (dim, dim) with dim == embeddings.shape[-1]")

    lead_shape = embeddings.shape[:-1]
    n = math.prod(lead_shape)
    dtype = embeddings.dtype
    itemsize = jnp.dtype(dtype).itemsize
    sub = max(8, 32 // itemsize)            # dtype-native sublane multiple (8/16/32)

    # NOTE: weight is cast to the embeddings dtype (PyTorch itself requires
    # matching dtypes for this matmul); accumulation stays f32 on the MXU.
    w_t = jnp.transpose(jnp.asarray(linear_transformation)).astype(dtype)

    emb2d = embeddings.reshape(n, dim)

    # --- dim < 128: pack k vectors per row so the last dim is lane-dense -----
    pack = 1
    if dim < 128 and 128 % dim == 0:
        k = 128 // dim
        if k > 1 and n % k == 0:
            pack = k
            emb2d = emb2d.reshape(n // pack, pack * dim)   # free row-major reshape
            # block-diagonal weight: each packed vector transformed independently
            w_t = jnp.kron(jnp.eye(pack, dtype=w_t.dtype), w_t)
        # TODO(synk): when n % (128 // dim) != 0 we fall back to the lane-sparse
        # layout (masked stores on the narrow last dim) instead of padding rows.

    rows, kdim = emb2d.shape
    n_out = w_t.shape[1]                    # == kdim (pack * dim)

    # --- generation-aware VMEM budget ----------------------------------------
    try:
        vmem_cap = int(pltpu.get_tpu_info().vmem_capacity_bytes)
    except Exception:
        vmem_cap = 64 << 20                 # conservative: v7x per-TensorCore
    vmem_limit = int(min((vmem_cap * 3) // 4, 100 << 20))   # ~48 MiB v7x, ~96 MiB v5e/v6e

    # --- weight column tile (tn): keep resident weight <= ~1/3 of the budget --
    w_full_bytes = kdim * n_out * itemsize
    if w_full_bytes <= vmem_limit // 3 or n_out % 128 != 0:
        tn = n_out
    else:
        tn = ((vmem_limit // 3) // (kdim * itemsize)) // 128 * 128
        tn = int(min(max(tn, 128), n_out))
    w_resident = kdim * tn * itemsize

    # --- row block (bm): derive it from the VMEM budget, not a fixed cap ------
    bytes_per_row = 2 * (kdim + tn) * itemsize          # double-buffered in + out
    slack = 4 << 20                                     # compiler scratch headroom
    tile_budget = max(vmem_limit - slack - w_resident, sub * bytes_per_row)
    bm = max(sub, (tile_budget // bytes_per_row) // sub * sub)

    # Keep >= ~8 row blocks: shards across v7x's 2 TensorCores and leaves the
    # BlockSpec pipeline enough steps to hide DMA behind compute.
    bm = min(bm, max(sub, _round_up(_cdiv(rows, 8), sub)))
    if block_rows is not None:                          # explicit user override only
        bm = min(bm, max(sub, (block_rows // sub) * sub))
    bm = min(bm, _round_up(rows, sub))
    bm = max(sub, bm)

    # --- precision: HIGHEST is free while memory-bound; relax when the f32
    # multi-pass MXU decomposition would dominate (dim >~160 v5e, ~210 v7x,
    # ~480 v6e -- 256 is a conservative middle ground).
    if precision is None:
        if dtype == jnp.float32 and kdim > 256:
            precision = jax.lax.Precision.HIGH
        else:
            precision = jax.lax.Precision.HIGHEST

    grid = (_cdiv(n_out, tn), _cdiv(rows, bm))          # weight-cols OUTER, rows INNER

    cost = pl.CostEstimate(
        flops=2 * rows * kdim * n_out,
        transcendentals=0,
        bytes_accessed=rows * (kdim + n_out) * itemsize + kdim * n_out * itemsize,
    )

    kernel = partial(_linear_operator_kernel, precision=precision)
    out_shape = jax.ShapeDtypeStruct((rows, n_out), dtype)
    emb_spec = pl.BlockSpec((bm, kdim), lambda j, i: (i, 0))     # streamed row blocks
    out_spec = pl.BlockSpec((bm, tn), lambda j, i: (i, j))
    compiler_params = pltpu.CompilerParams(
        # Row axis is sharded across TensorCores; the weight-column axis stays
        # on one core (sharding it would re-read the embeddings per core).
        dimension_semantics=("arbitrary", "parallel"),
        vmem_limit_bytes=vmem_limit,
    )

    def _call(single_buffer_weight):
        kwargs = {"pipeline_mode": pl.Buffered(1)} if single_buffer_weight else {}
        w_spec = pl.BlockSpec((kdim, tn), lambda j, i: (0, j), **kwargs)
        return pl.pallas_call(
            kernel,
            out_shape=out_shape,
            grid=grid,
            in_specs=[emb_spec, w_spec],
            out_specs=out_spec,
            compiler_params=compiler_params,
            cost_estimate=cost,
        )(emb2d, w_t)

    try:
        # Weight block index is constant along the inner (row) axis, so a
        # single pipeline buffer halves its resident VMEM footprint.
        out2d = _call(True)
    except Exception:
        out2d = _call(False)

    return out2d.reshape(*lead_shape, dim)


if __name__ == "__main__":
    # Small shapes consistent with the module: a batch of dim-sized vectors
    # transformed by a (dim, dim) matrix.
    dim = 32
    batch, seq = 2, 8                       # embeddings (2, 8, 32)

    key = jax.random.PRNGKey(0)
    k_emb, k_w, k_emb2 = jax.random.split(key, 3)

    embeddings = jax.random.normal(k_emb, (batch, seq, dim), dtype=jnp.float32)
    # PyTorch __init__ uses torch.eye(dim); perturb it deterministically so the
    # kernel does real work instead of an identity pass-through.
    linear_transformation = (jnp.eye(dim, dtype=jnp.float32)
                             + 0.01 * jax.random.normal(k_w, (dim, dim), dtype=jnp.float32))

    out = linear_operator(embeddings, linear_transformation)
    out = jax.block_until_ready(out)

    # Reference: out[..., i] = sum_j W[i, j] * emb[..., j]
    ref = jnp.einsum("ij,...j->...i", linear_transformation, embeddings,
                     precision=jax.lax.Precision.HIGHEST)
    assert out.shape == embeddings.shape and out.dtype == embeddings.dtype
    assert jnp.allclose(out, ref, atol=1e-5, rtol=1e-5)

    # Also exercise the unpacked path (n not divisible by 128 // dim).
    embeddings2 = jax.random.normal(k_emb2, (batch, 7, dim), dtype=jnp.float32)
    out2 = jax.block_until_ready(linear_operator(embeddings2, linear_transformation))
    ref2 = jnp.einsum("ij,...j->...i", linear_transformation, embeddings2,
                      precision=jax.lax.Precision.HIGHEST)
    assert out2.shape == embeddings2.shape and out2.dtype == embeddings2.dtype
    assert jnp.allclose(out2, ref2, atol=1e-5, rtol=1e-5)

    print("KERNEL_OK")
</pallas_src>

<mosaic_0001>
module attributes {stable_mosaic.version = 11 : i64} {
  func.func @_linear_operator_kernel(%arg0: i32, %arg1: i32, %arg2: memref<8x128xf32, #tpu.memory_space<vmem>>, %arg3: memref<128x128xf32, #tpu.memory_space<vmem>>, %arg4: memref<8x128xf32, #tpu.memory_space<vmem>>) attributes {dimension_semantics = [#tpu.dimension_semantics<arbitrary>, #tpu.dimension_semantics<parallel>], iteration_bounds = array<i64: 1, 1>, scalar_prefetch = 0 : i64, scratch_operands = 0 : i64, tpu.core_type = #tpu.core_type<tc>, window_params = [{transform_indices = @transform_0, window_bounds = array<i64: 8, 128>}, {pipeline_mode = #tpu.pipeline_mode<synchronous>, transform_indices = @transform_1, window_bounds = array<i64: 128, 128>}, {transform_indices = @transform_2, window_bounds = array<i64: 8, 128>}]} {
    %c0 = arith.constant 0 : index
    %c0_0 = arith.constant 0 : index
    %0 = vector.load %arg2[%c0, %c0_0] : memref<8x128xf32, #tpu.memory_space<vmem>>, vector<8x128xf32>
    %c0_1 = arith.constant 0 : index
    %c0_2 = arith.constant 0 : index
    %1 = vector.load %arg3[%c0_1, %c0_2] : memref<128x128xf32, #tpu.memory_space<vmem>>, vector<128x128xf32>
    %cst = arith.constant dense<0.000000e+00> : vector<8x128xf32>
    %2 = tpu.matmul %0, %1, %cst {dimension_numbers = #tpu.dot_dimension_numbers<[1], [0], [0], [1], [0, 0, 1, 1], [], []>, precision = #tpu.contract_precision<fp32>} : vector<8x128xf32>, vector<128x128xf32>, vector<8x128xf32> -> vector<8x128xf32>
    %c0_3 = arith.constant 0 : index
    %c0_4 = arith.constant 0 : index
    %3 = vector.load %arg4[%c0_3, %c0_4] : memref<8x128xf32, #tpu.memory_space<vmem>>, vector<8x128xf32>
    tpu.vector_store %arg4[%c0_3, %c0_4], %2 {strides = array<i32>} : memref<8x128xf32, #tpu.memory_space<vmem>>, vector<8x128xf32>,
    return
  }
  func.func @transform_0(%arg0: i32, %arg1: i32) -> (i32, i32) {
    %c0_i32 = arith.constant 0 : i32
    %c0_i32_0 = arith.constant 0 : i32
    return %arg1, %c0_i32 : i32, i32
  }
  func.func @transform_1(%arg0: i32, %arg1: i32) -> (i32, i32) {
    %c0_i32 = arith.constant 0 : i32
    %c0_i32_0 = arith.constant 0 : i32
    return %c0_i32, %arg0 : i32, i32
  }
  func.func @transform_2(%arg0: i32, %arg1: i32) -> (i32, i32) {
    %c0_i32 = arith.constant 0 : i32
    return %arg1, %arg0 : i32, i32
  }
}

module attributes {stable_mosaic.version = 11 : i64} {
  func.func @_linear_operator_kernel(%arg0: i32, %arg1: i32, %arg2: memref<8x128xf32, #tpu.memory_space<vmem>>, %arg3: memref<128x128xf32, #tpu.memory_space<vmem>>, %arg4: memref<8x128xf32, #tpu.memory_space<vmem>>) attributes {dimension_semantics = [#tpu.dimension_semantics<arbitrary>, #tpu.dimension_semantics<parallel>], iteration_bounds = array<i64: 1, 1>, scalar_prefetch = 0 : i64, scratch_operands = 0 : i64, tpu.core_type = #tpu.core_type<tc>, window_params = [{transform_indices = @transform_0, window_bounds = array<i64: 8, 128>}, {transform_indices = @transform_1, window_bounds = array<i64: 128, 128>}, {transform_indices = @transform_2, window_bounds = array<i64: 8, 128>}]} {
    %c0 = arith.constant 0 : index
    %c0_0 = arith.constant 0 : index
    %0 = vector.load %arg2[%c0, %c0_0] : memref<8x128xf32, #tpu.memory_space<vmem>>, vector<8x128xf32>
    %c0_1 = arith.constant 0 : index
    %c0_2 = arith.constant 0 : index
    %1 = vector.load %arg3[%c0_1, %c0_2] : memref<128x128xf32, #tpu.memory_space<vmem>>, vector<128x128xf32>
    %cst = arith.constant dense<0.000000e+00> : vector<8x128xf32>
    %2 = tpu.matmul %0, %1, %cst {dimension_numbers = #tpu.dot_dimension_numbers<[1], [0], [0], [1], [0, 0, 1, 1], [], []>, precision = #tpu.contract_precision<fp32>} : vector<8x128xf32>, vector<128x128xf32>, vector<8x128xf32> -> vector<8x128xf32>
    %c0_3 = arith.constant 0 : index
    %c0_4 = arith.constant 0 : index
    %3 = vector.load %arg4[%c0_3, %c0_4] : memref<8x128xf32, #tpu.memory_space<vmem>>, vector<8x128xf32>
    tpu.vector_store %arg4[%c0_3, %c0_4], %2 {strides = array<i32>} : memref<8x128xf32, #tpu.memory_space<vmem>>, vector<8x128xf32>,
    return
  }
  func.func @transform_0(%arg0: i32, %arg1: i32) -> (i32, i32) {
    %c0_i32 = arith.constant 0 : i32
    %c0_i32_0 = arith.constant 0 : i32
    return %arg1, %c0_i32 : i32, i32
  }
  func.func @transform_1(%arg0: i32, %arg1: i32) -> (i32, i32) {
    %c0_i32 = arith.constant 0 : i32
    %c0_i32_0 = arith.constant 0 : i32
    return %c0_i32, %arg0 : i32, i32
  }
  func.func @transform_2(%arg0: i32, %arg1: i32) -> (i32, i32) {
    %c0_i32 = arith.constant 0 : i32
    return %arg1, %arg0 : i32, i32
  }
}

</mosaic_0001>

<bundles_post_ra>
// kernel: tpu_custom_call.1
= control target key start
LH: loop header
LB: loop body
LE: loop exit
PB: predicated region body
PF: predicated region fallthrough
CT: control target
= control target key end

     0   :  { %7 = vsyncpa [#allocation3], 0  ;;  %s1578_s0 = inlined_call_operand.hbm [shape: f32[4,128], index: 0, kind: input, shape index: {}]   ;;  %s1579_s1 = inlined_call_operand.hbm [shape: f32[128,128], index: 1, kind: input, shape index: {}]   ;;  %s1580_s2 = inlined_call_operand.hbm [shape: f32[4,128], index: 2, kind: output, shape index: {}]  }
   0x1   :  { %8 = vsyncpa [#allocation6], 0 }
   0x2   :  { %9 = vsyncpa [#allocation4], 0 }
   0x3   :  { %14 = vsyncadd [#allocation3], 64  ;;  %s1264_s9 = smov [#allocation2]   ;;  %s1192_s13 = scalar_lea.hbm %s1578_s0, 64 }
   0x4   :  { %s15_s10 = sshll.u32 %s1264_s9, 4  ;;  %p1193_p0 = scmp.ne.s32.totalorder %s1578_s0, %s1192_s13  ;;  %s16_s10 = int_to_ptr.vmem [resolvable:$true] %s15_s10 }
   0x5   :  { %p1196_p1 = scmp.lt.u32.totalorder %s1192_s13, %s1578_s0 }
   0x7   :  { %p1198_p2 = pnand %p1196_p1, %p1193_p0 }
   0x9   :  { %1201 = shalt.err (!%p1198_p2)
}
   0xa   :  { %s1202_s18 = scalar_lea.vmem %s16_s10, 64  ;;  %s1206_s19 = scalar_lea.vmem %s16_s10, 128 }
   0xb   :  { %p1203_p3 = scmp.ne.s32.totalorder %s16_s10, %s1202_s18  ;;  %p1207_p4 = scmp.lt.s32.totalorder %s16_s10, %s16_s10 }
   0xc   :  { %p1208_p5 = scmp.lt.s32.totalorder %s1206_s19, %s1202_s18 }
   0xe   :  { %p1209_p6 = por %p1208_p5, %p1207_p4 }
  0x10   :  { %p1210_p7 = pnand %p1209_p6, %p1203_p3 }
  0x12   :  { %1213 = shalt.err (!%p1210_p7)
}
  0x13   :  { %s1265_s20 = smov 64   ;;  %s1266_s21 = smov 4  }
  0x14   :  { %21 = dma.hbm_to_vmem [thread:$0]  %s1578_s0, 64, %s16_s10, [#allocation3], %s1265_s20, %s1265_s20, %s1266_s21  }
  0x15   :  { %s1267_s24 = smov [#allocation5]   ;;  %s1214_s28 = scalar_lea.hbm %s1579_s1, 2048 }
  0x16   :  { %s27_s25 = sshll.u32 %s1267_s24, 4  ;;  %p1215_p8 = scmp.ne.s32.totalorder %s1579_s1, %s1214_s28  ;;  %s28_s25 = int_to_ptr.vmem [resolvable:$true] %s27_s25 }
  0x17   :  { %p1218_p9 = scmp.lt.u32.totalorder %s1214_s28, %s1579_s1 }
  0x19   :  { %p1220_p10 = pnand %p1218_p9, %p1215_p8 }
  0x1b   :  { %1223 = shalt.err (!%p1220_p10)
}
  0x1c   :  { %s1224_s5 = scalar_lea.vmem %s28_s25, 2048  ;;  %p1229_p12 = scmp.lt.s32.totalorder %s28_s25, %s28_s25 }
  0x1d   :  { %p1225_p11 = scmp.ne.s32.totalorder %s28_s25, %s1224_s5  ;;  %p1230_p13 = scmp.lt.s32.totalorder %s1224_s5, %s1224_s5 }
  0x1f   :  { %p1231_p0 = por %p1230_p13, %p1229_p12 }
  0x21   :  { %p1232_p1 = pnand %p1231_p0, %p1225_p11 }
  0x23   :  { %1235 = shalt.err (!%p1232_p1)
}
  0x24   :  { %s1268_s0 = smov 128   ;;  %s1269_s6 = smov 8  }
  0x25   :  { %33 = dma.hbm_to_vmem [thread:$0]  %s1579_s1, 2048, %s28_s25, [#allocation6], %s1268_s0, %s1268_s0, %s1269_s6  }
  0x26   :  { %1258 = dma.done.wait [#allocation3], 128  }
  0x27   :  { %1259 = vsyncadd [#allocation3], 4294967168 }
  0x28   :  { %1260 = dma.done.wait [#allocation6], 2048  }
  0x29   :  { %1261 = vsyncadd [#allocation6], 4294965248  ;;  %v1270_v0 = vmov 0.0|0.0   ;;  %vm1271_vm0 = vmmov 0   ;;  %v1272_v1 = vmov 0.0   ;;  %v41_v2 = vld [vmem:[#allocation5] sm:$0xff] }
  0x2a   :  { %1029 = vmatprep.subr.bf16.mxu1 %v1270_v0  ;;  %1101 = vmatprep.subr.bf16.mxu0 %v1270_v0  ;;  %v42_v3 = vld [vmem:[#allocation5 + $0x8] sm:$0xff]  ;;  %v43_v4 = vld [vmem:[#allocation5 + $0x10] sm:$0xff]  ;;  %v58_v5 = vand.u32 4294901760, %v41_v2  ;;  %v44_v7 = vld [vmem:[#allocation5 + $0x18] sm:$0xff] }
  0x2b   :  { %851 = vmatprep.mubr.msk.f32.mxu1 %vm1271_vm0, %v1272_v1  ;;  %956 = vmatprep.mubr.msk.f32.mxu0 %vm1271_vm0, %v1272_v1  ;;  %v61_v6 = vand.u32 4294901760, %v42_v3  ;;  %v64_v8 = vand.u32 4294901760, %v43_v4  ;;  %v67_v9 = vand.u32 4294901760, %v44_v7  ;;  %v45_v10 = vld [vmem:[#allocation5 + $0x20] sm:$0xff]  ;;  %v46_v11 = vld [vmem:[#allocation5 + $0x28] sm:$0xff]  ;;  %v47_v16 = vld [vmem:[#allocation5 + $0x30] sm:$0xff] }
  0x2c   :  { %v70_v14 = vand.u32 4294901760, %v45_v10  ;;  %v73_v15 = vand.u32 4294901760, %v46_v11  ;;  %v48_v17 = vld [vmem:[#allocation5 + $0x38] sm:$0xff]  ;;  %v76_v19 = vand.u32 4294901760, %v47_v16  ;;  %v1336_v21 = vld [vmem:[#allocation5 + $0x40] sm:$0xff]  ;;  %v1338_v22 = vld [vmem:[#allocation5 + $0x48] sm:$0xff]  ;;  %v1352_v29 = vsub.f32 %v41_v2, %v58_v5 }
  0x2d   :  { %v1322_v12 = vpack.c.bf16 %v61_v6, %v58_v5  ;;  %v1326_v13 = vpack.c.bf16 %v67_v9, %v64_v8  ;;  %v79_v20 = vand.u32 4294901760, %v48_v17  ;;  %v82_v24 = vand.u32 4294901760, %v1336_v21  ;;  %v40_v26 = vld [vmem:[#allocation2] sm:$0xff]  ;;  %v1348_v27 = vld [vmem:[#allocation5 + $0x50] sm:$0xff]  ;;  %v1364_v35 = vld [vmem:[#allocation5 + $0x60] sm:$0xff] }
  0x2e   :  { %v1332_v18 = vpack.c.bf16 %v73_v15, %v70_v14  ;;  %v85_v25 = vand.u32 4294901760, %v1338_v22  ;;  %v1350_v28 = vld [vmem:[#allocation5 + $0x58] sm:$0xff]  ;;  %v1354_v30 = vand.u32 4294901760, %v40_v26  ;;  %v1356_v31 = vsub.f32 %v42_v3, %v61_v6  ;;  %v1368_v36 = vld [vmem:[#allocation5 + $0x68] sm:$0xff]  ;;  %v1387_v43 = vld [vmem:[#allocation5 + $0x70] sm:$0xff] }
  0x2f   :  { %1031 = vmatpush3.bf16.msra.mxu1 %v1322_v12  ;;  %1103 = vmatpush3.bf16.msra.mxu0 %v1322_v12  ;;  %v1342_v23 = vpack.c.bf16 %v79_v20, %v76_v19  ;;  %v88_v33 = vand.u32 4294901760, %v1348_v27  ;;  %v91_v34 = vand.u32 4294901760, %v1350_v28  ;;  %v1370_v37 = vsub.f32 %v43_v4, %v64_v8  ;;  %v1389_v44 = vld [vmem:[#allocation5 + $0x78] sm:$0xff] }
  0x30   :  { %1032 = vmatprep.subr.bf16.mxu1 %v1270_v0  ;;  %1104 = vmatprep.subr.bf16.mxu0 %v1270_v0  ;;  %v1360_v32 = vpack.c.bf16 %v85_v25, %v82_v24  ;;  %v1372_v38 = vsub.f32 %v44_v7, %v67_v9  ;;  %v94_v39 = vand.u32 4294901760, %v1364_v35  ;;  %v1376_v40 = vsub.f32 %v40_v26, %v1354_v30 }
  0x31   :  { %v1384_v41 = vpack.c.bf16 %v91_v34, %v88_v33  ;;  %v97_v42 = vand.u32 4294901760, %v1368_v36  ;;  %v151_v45 = vand.u32 4294901760, %v1352_v29  ;;  %v158_v46 = vand.u32 4294901760, %v1356_v31 }
  0x32   :  { %v1395_v47 = vsub.f32 %v45_v10, %v70_v14  ;;  %v1397_v48 = vsub.f32 %v46_v11, %v73_v15  ;;  %v100_v49 = vand.u32 4294901760, %v1387_v43  ;;  %v103_v50 = vand.u32 4294901760, %v1389_v44 }
  0x33   :  { %1034 = vmatpush3.bf16.msra.mxu1 %v1326_v13  ;;  %1106 = vmatpush3.bf16.msra.mxu0 %v1326_v13  ;;  %v140_v51 = vand.u32 4294901760, %v1376_v40  ;;  %v165_v52 = vand.u32 4294901760, %v1370_v37  ;;  %v1409_v53 = vpack.c.bf16 %v97_v42, %v94_v39  ;;  %v152_v54 = vsub.f32 %v1352_v29, %v151_v45 }
  0x34   :  { %1035 = vmatprep.subr.bf16.mxu1 %v1270_v0  ;;  %1107 = vmatprep.subr.bf16.mxu0 %v1270_v0  ;;  %v159_v55 = vsub.f32 %v1356_v31, %v158_v46  ;;  %v172_v56 = vand.u32 4294901760, %v1372_v38  ;;  %v1416_v57 = vsub.f32 %v47_v16, %v76_v19  ;;  %v1418_v58 = vsub.f32 %v48_v17, %v79_v20 }
  0x35   :  { %v141_v59 = vsub.f32 %v1376_v40, %v140_v51  ;;  %v166_v60 = vsub.f32 %v1370_v37, %v165_v52  ;;  %v179_v61 = vand.u32 4294901760, %v1395_v47  ;;  %v186_v62 = vand.u32 4294901760, %v1397_v48 }
  0x36   :  { %v1430_v63 = vpack.c.bf16 %v103_v50, %v100_v49  ;;  %v153_v2 = vand.u32 4294901760, %v152_v54  ;;  %v160_v3 = vand.u32 4294901760, %v159_v55  ;;  %v173_v4 = vsub.f32 %v1372_v38, %v172_v56 }
  0x37   :  { %1037 = vmatpush3.bf16.msra.mxu1 %v1332_v18  ;;  %1109 = vmatpush3.bf16.msra.mxu0 %v1332_v18  ;;  %v1436_v5 = vsub.f32 %v1336_v21, %v82_v24  ;;  %v1439_v6 = vsub.f32 %v1338_v22, %v85_v25  ;;  %v1126_v7 = vpack.c.bf16 %v158_v46, %v151_v45  ;;  %v142_v8 = vand.u32 4294901760, %v141_v59 }
  0x38   :  { %1038 = vmatprep.subr.bf16.mxu1 %v1270_v0  ;;  %1110 = vmatprep.subr.bf16.mxu0 %v1270_v0  ;;  %v167_v9 = vand.u32 4294901760, %v166_v60  ;;  %v180_v10 = vsub.f32 %v1395_v47, %v179_v61  ;;  %v187_v11 = vsub.f32 %v1397_v48, %v186_v62  ;;  %v1054_v14 = vpack.c.bf16 %v160_v3, %v153_v2 }
  0x39   :  { %v174_v15 = vand.u32 4294901760, %v173_v4  ;;  %v193_v16 = vand.u32 4294901760, %v1416_v57  ;;  %v200_v17 = vand.u32 4294901760, %v1418_v58  ;;  %v1452_v19 = vsub.f32 %v1348_v27, %v88_v33 }
  0x3a   :  { %v1457_v20 = vsub.f32 %v1350_v28, %v91_v34  ;;  %v1129_v21 = vpack.c.bf16 %v172_v56, %v165_v52  ;;  %v181_v22 = vand.u32 4294901760, %v180_v10  ;;  %v188_v24 = vand.u32 4294901760, %v187_v11 }
  0x3b   :  { %1040 = vmatpush3.bf16.msra.mxu1 %v1342_v23  ;;  %1112 = vmatpush3.bf16.msra.mxu0 %v1342_v23  ;;  %v207_v25 = vand.u32 4294901760, %v1436_v5  ;;  %v1057_v26 = vpack.c.bf16 %v174_v15, %v167_v9  ;;  %v194_v45 = vsub.f32 %v1416_v57, %v193_v16  ;;  %v201_v27 = vsub.f32 %v1418_v58, %v200_v17 }
  0x3c   :  { %1041 = vmatprep.subr.bf16.mxu1 %v1270_v0  ;;  %1113 = vmatprep.subr.bf16.mxu0 %v1270_v0  ;;  %v214_v33 = vand.u32 4294901760, %v1439_v6  ;;  %v1468_v28 = vsub.f32 %v1364_v35, %v94_v39  ;;  %v1473_v34 = vsub.f32 %v1368_v36, %v97_v42  ;;  %v1060_v46 = vpack.c.bf16 %v188_v24, %v181_v22 }
  0x3d   :  { %v208_v52 = vsub.f32 %v1436_v5, %v207_v25  ;;  %v221_v54 = vand.u32 4294901760, %v1452_v19  ;;  %v195_v35 = vand.u32 4294901760, %v194_v45  ;;  %v202_v39 = vand.u32 4294901760, %v201_v27 }
  0x3e   :  { %v215_v55 = vsub.f32 %v1439_v6, %v214_v33  ;;  %v228_v36 = vand.u32 4294901760, %v1457_v20  ;;  %v1488_v42 = vsub.f32 %v1387_v43, %v100_v49  ;;  %v1493_v56 = vsub.f32 %v1389_v44, %v103_v50 }
  0x3f   :  { %1043 = vmatpush3.bf16.msra.mxu1 %v1360_v32  ;;  %1115 = vmatpush3.bf16.msra.mxu0 %v1360_v32  ;;  %v1135_v59 = vpack.c.bf16 %v200_v17, %v193_v16  ;;  %v209_v60 = vand.u32 4294901760, %v208_v52  ;;  %v1063_v2 = vpack.c.bf16 %v202_v39, %v195_v35  ;;  %v242_v43 = vand.u32 4294901760, %v1473_v34 }
  0x40   :  { %1044 = vmatprep.subr.bf16.mxu1 %v1270_v0  ;;  %1116 = vmatprep.subr.bf16.mxu0 %v1270_v0  ;;  %v216_v3 = vand.u32 4294901760, %v215_v55  ;;  %v229_v4 = vsub.f32 %v1457_v20, %v228_v36  ;;  %v1138_v44 = vpack.c.bf16 %v214_v33, %v207_v25  ;;  %v256_v11 = vand.u32 4294901760, %v1493_v56 }
  0x41   :  { %v243_v10 = vsub.f32 %v1473_v34, %v242_v43 }
  0x42   :  { %v230_v9 = vand.u32 4294901760, %v229_v4  ;;  %v257_v22 = vsub.f32 %v1493_v56, %v256_v11 }
  0x43   :  { %1046 = vmatpush3.bf16.msra.mxu1 %v1384_v41  ;;  %1118 = vmatpush3.bf16.msra.mxu0 %v1384_v41  ;;  %v244_v17 = vand.u32 4294901760, %v243_v10 }
  0x44   :  { %1047 = vmatprep.subr.bf16.mxu1 %v1270_v0  ;;  %1119 = vmatprep.subr.bf16.mxu0 %v1270_v0  ;;  %v258_v45 = vand.u32 4294901760, %v257_v22 }
  0x47   :  { %1049 = vmatpush3.bf16.msra.mxu1 %v1409_v53  ;;  %1121 = vmatpush3.bf16.msra.mxu0 %v1409_v53 }
  0x48   :  { %1050 = vmatprep.subr.bf16.mxu1 %v1270_v0  ;;  %1122 = vmatprep.subr.bf16.mxu0 %v1270_v0 }
  0x4b   :  { %1052 = vmatpush3.bf16.msra.mxu1 %v1430_v63  ;;  %1124 = vmatpush3.bf16.msra.mxu0 %v1430_v63 }
  0x4c   :  { %1053 = vmatprep.subr.bf16.mxu1 %v1270_v0  ;;  %1125 = vmatprep.subr.bf16.mxu0 %v1270_v0 }
  0x4e   :  { %852 = vmatmul.mubr.f32.vlgmr.msra.gmra.mrb[0].mxu1 %v142_v8  ;;  %957 = vmatmul.mubr.f32.vlgmr.msra.gmra.mrb[0].mxu0 %v140_v51  ;;  %v1132_v51 = vpack.c.bf16 %v186_v62, %v179_v61  ;;  %v222_v61 = vsub.f32 %v1452_v19, %v221_v54  ;;  %v235_v62 = vand.u32 4294901760, %v1468_v28  ;;  %v1066_v8 = vpack.c.bf16 %v216_v3, %v209_v60 }
  0x4f   :  { %1055 = vmatpush3.bf16.msra.mxu1 %v1054_v14  ;;  %1127 = vmatpush3.bf16.msra.mxu0 %v1126_v7  ;;  %v249_v7 = vand.u32 4294901760, %v1488_v42  ;;  %v1141_v14 = vpack.c.bf16 %v228_v36, %v221_v54 }
  0x50   :  { %1056 = vmatprep.subr.bf16.mxu1 %v1270_v0  ;;  %1128 = vmatprep.subr.bf16.mxu0 %v1270_v0  ;;  %v223_v49 = vand.u32 4294901760, %v222_v61  ;;  %v236_v50 = vsub.f32 %v1468_v28, %v235_v62  ;;  %v1144_v25 = vpack.c.bf16 %v242_v43, %v235_v62 }
  0x51   :  { %886 = vmatprep.mubr.msk.f32.mxu1 %vm1271_vm0, %v1272_v1  ;;  %991 = vmatprep.mubr.msk.f32.mxu0 %vm1271_vm0, %v1272_v1  ;;  %v1147_v33 = vpack.c.bf16 %v256_v11, %v249_v7 }
  0x52   :  { %v237_v15 = vand.u32 4294901760, %v236_v50  ;;  %v1069_v16 = vpack.c.bf16 %v230_v9, %v223_v49 }
  0x53   :  { %1058 = vmatpush3.bf16.msra.mxu1 %v1057_v26  ;;  %1130 = vmatpush3.bf16.msra.mxu0 %v1129_v21  ;;  %v250_v21 = vsub.f32 %v1488_v42, %v249_v7 }
  0x54   :  { %1059 = vmatprep.subr.bf16.mxu1 %v1270_v0  ;;  %1131 = vmatprep.subr.bf16.mxu0 %v1270_v0  ;;  %v1072_v24 = vpack.c.bf16 %v244_v17, %v237_v15 }
  0x55   :  { %v251_v26 = vand.u32 4294901760, %v250_v21 }
  0x57   :  { %1061 = vmatpush3.bf16.msra.mxu1 %v1060_v46  ;;  %1133 = vmatpush3.bf16.msra.mxu0 %v1132_v51  ;;  %v1075_v27 = vpack.c.bf16 %v258_v45, %v251_v26  ;;  %v1078_v46 = vpack.c.bf16 %v1356_v31, %v1352_v29  ;;  %v1081_v51 = vpack.c.bf16 %v1372_v38, %v1370_v37 }
  0x58   :  { %1062 = vmatprep.subr.bf16.mxu1 %v1270_v0  ;;  %1134 = vmatprep.subr.bf16.mxu0 %v1270_v0  ;;  %v1084_v29 = vpack.c.bf16 %v1397_v48, %v1395_v47 }
  0x5b   :  { %1064 = vmatpush3.bf16.msra.mxu1 %v1063_v2  ;;  %1136 = vmatpush3.bf16.msra.mxu0 %v1135_v59 }
  0x5c   :  { %1065 = vmatprep.subr.bf16.mxu1 %v1270_v0  ;;  %1137 = vmatprep.subr.bf16.mxu0 %v1270_v0 }
  0x5f   :  { %1067 = vmatpush3.bf16.msra.mxu1 %v1066_v8  ;;  %1139 = vmatpush3.bf16.msra.mxu0 %v1138_v44 }
  0x60   :  { %1068 = vmatprep.subr.bf16.mxu1 %v1270_v0  ;;  %1140 = vmatprep.subr.bf16.mxu0 %v1270_v0 }
  0x63   :  { %1070 = vmatpush3.bf16.msra.mxu1 %v1069_v16  ;;  %1142 = vmatpush3.bf16.msra.mxu0 %v1141_v14 }
  0x64   :  { %1071 = vmatprep.subr.bf16.mxu1 %v1270_v0  ;;  %1143 = vmatprep.subr.bf16.mxu0 %v1270_v0 }
  0x67   :  { %1073 = vmatpush3.bf16.msra.mxu1 %v1072_v24  ;;  %1145 = vmatpush3.bf16.msra.mxu0 %v1144_v25 }
  0x68   :  { %1074 = vmatprep.subr.bf16.mxu1 %v1270_v0  ;;  %1146 = vmatprep.subr.bf16.mxu0 %v1270_v0 }
  0x6b   :  { %1076 = vmatpush3.bf16.msra.mxu1 %v1075_v27  ;;  %1148 = vmatpush3.bf16.msra.mxu0 %v1147_v33 }
  0x6c   :  { %1077 = vmatprep.subr.bf16.mxu1 %v1270_v0  ;;  %1149 = vmatprep.subr.bf16.mxu0 %v1270_v0 }
  0x6e   :  { %887 = vmatmul.mubr.f32.vlgmr.msra.gmra.mrb[0].mxu1 %v1354_v30  ;;  %992 = vmatmul.mubr.f32.vlgmr.msra.gmra.mrb[0].mxu0 %v1354_v30 }
  0x6f   :  { %1079 = vmatpush3.bf16.msra.mxu1 %v1078_v46  ;;  %1151 = vmatpush3.bf16.msra.mxu0 %v1322_v12  ;;  %v1087_v12 = vpack.c.bf16 %v1418_v58, %v1416_v57 }
  0x70   :  { %1080 = vmatprep.subr.bf16.mxu1 %v1270_v0  ;;  %1152 = vmatprep.subr.bf16.mxu0 %v1270_v0 }
  0x71   :  { %921 = vmatprep.mubr.msk.f32.mxu1 %vm1271_vm0, %v1272_v1  ;;  %1026 = vmatprep.mubr.msk.f32.mxu0 %vm1271_vm0, %v1272_v1  ;;  %v1090_v1 = vpack.c.bf16 %v1439_v6, %v1436_v5 }
  0x73   :  { %1082 = vmatpush3.bf16.msra.mxu1 %v1081_v51  ;;  %1154 = vmatpush3.bf16.msra.mxu0 %v1326_v13  ;;  %v1093_v13 = vpack.c.bf16 %v1457_v20, %v1452_v19 }
  0x74   :  { %1083 = vmatprep.subr.bf16.mxu1 %v1270_v0  ;;  %1155 = vmatprep.subr.bf16.mxu0 %v1270_v0 }
  0x77   :  { %1085 = vmatpush3.bf16.msra.mxu1 %v1084_v29  ;;  %1157 = vmatpush3.bf16.msra.mxu0 %v1332_v18  ;;  %v1096_v18 = vpack.c.bf16 %v1473_v34, %v1468_v28 }
  0x78   :  { %1086 = vmatprep.subr.bf16.mxu1 %v1270_v0  ;;  %1158 = vmatprep.subr.bf16.mxu0 %v1270_v0 }
  0x7b   :  { %1088 = vmatpush3.bf16.msra.mxu1 %v1087_v12  ;;  %1160 = vmatpush3.bf16.msra.mxu0 %v1342_v23  ;;  %v1099_v23 = vpack.c.bf16 %v1493_v56, %v1488_v42 }
  0x7c   :  { %1089 = vmatprep.subr.bf16.mxu1 %v1270_v0  ;;  %1161 = vmatprep.subr.bf16.mxu0 %v1270_v0 }
  0x7f   :  { %1091 = vmatpush3.bf16.msra.mxu1 %v1090_v1  ;;  %1163 = vmatpush3.bf16.msra.mxu0 %v1360_v32 }
  0x80   :  { %1092 = vmatprep.subr.bf16.mxu1 %v1270_v0  ;;  %1164 = vmatprep.subr.bf16.mxu0 %v1270_v0 }
  0x83   :  { %1094 = vmatpush3.bf16.msra.mxu1 %v1093_v13  ;;  %1166 = vmatpush3.bf16.msra.mxu0 %v1384_v41 }
  0x84   :  { %1095 = vmatprep.subr.bf16.mxu1 %v1270_v0  ;;  %1167 = vmatprep.subr.bf16.mxu0 %v1270_v0 }
  0x87   :  { %1097 = vmatpush3.bf16.msra.mxu1 %v1096_v18  ;;  %1169 = vmatpush3.bf16.msra.mxu0 %v1409_v53 }
  0x88   :  { %1098 = vmatprep.subr.bf16.mxu1 %v1270_v0  ;;  %1170 = vmatprep.subr.bf16.mxu0 %v1270_v0 }
  0x8b   :  { %1100 = vmatpush3.bf16.msra.mxu1 %v1099_v23  ;;  %1172 = vmatpush3.bf16.msra.mxu0 %v1430_v63 }
  0x8e   :  { %922 = vmatmul.mubr.f32.vlgmr.msra.gmra.mrb[0].mxu1 %v1376_v40  ;;  %1027 = vmatmul.mubr.f32.vlgmr.msra.gmra.mrb[0].mxu0 %v1354_v30 }
 0x161   :  { %v399_v31 = vpop.f32.mrb[0].mxu1  ;;  %v694_v32 = vpop.f32.mrb[0].mxu0 }
 0x162   :  { %v1173_v37 = vadd.f32 %v694_v32, %v399_v31  ;;  %v923_v38 = vpop.f32.mrb[1].mxu1  ;;  %v1028_v41 = vpop.f32.mrb[1].mxu0 }
 0x164   :  { %698 = vst [vmem:[#allocation7] sm:$0xff] %v1173_v37 }
 0x165   :  { %703 = vsyncadd [#allocation4], 64  ;;  %s1273_s1 = smov [#allocation7]  }
 0x166   :  { %s704_s9 = sshll.u32 %s1273_s1, 4  ;;  %s705_s9 = int_to_ptr.vmem [resolvable:$true] %s704_s9 }
 0x167   :  { %s1236_s10 = scalar_lea.vmem %s705_s9, 64  ;;  %s1240_s11 = scalar_lea.vmem %s705_s9, 128 }
 0x168   :  { %p1237_p2 = scmp.ne.s32.totalorder %s705_s9, %s1236_s10  ;;  %p1241_p3 = scmp.lt.s32.totalorder %s705_s9, %s705_s9 }
 0x169   :  { %p1242_p4 = scmp.lt.s32.totalorder %s1240_s11, %s1236_s10 }
 0x16b   :  { %p1243_p5 = por %p1242_p4, %p1241_p3 }
 0x16d   :  { %p1244_p6 = pnand %p1243_p5, %p1237_p2 }
 0x16f   :  { %1247 = shalt.err (!%p1244_p6)
}
 0x170   :  { %s1248_s14 = scalar_lea.hbm %s1580_s2, 64 }
 0x171   :  { %p1249_p7 = scmp.ne.s32.totalorder %s1580_s2, %s1248_s14  ;;  %p1252_p8 = scmp.lt.u32.totalorder %s1248_s14, %s1580_s2 }
 0x173   :  { %p1254_p9 = pnand %p1252_p8, %p1249_p7 }
 0x175   :  { %1257 = shalt.err (!%p1254_p9)
}
 0x176   :  { %710 = dma.vmem_to_hbm [thread:$0]  %s705_s9, 64, %s1580_s2, [#allocation4], %s1265_s20, %s1265_s20, %s1266_s21  }
 0x177   :  { %1262 = dma.done.wait [#allocation4], 128  }
 0x178   :  { %1263 = vsyncadd [#allocation4], 4294967168 }
 0x179   :  { %714 = vsyncpa [#allocation3], 1 }
 0x17a   :  { %715 = vsyncpa [#allocation6], 1 }
 0x17b   :  { %716 = vsyncpa [#allocation4], 1 }

// kernel: tpu_custom_call.1
= control target key start
LH: loop header
LB: loop body
LE: loop exit
PB: predicated region body
PF: predicated region fallthrough
CT: control target
= control target key end

     0   :  { %7 = vsyncpa [#allocation3], 0  ;;  %s1578_s0 = inlined_call_operand.hbm [shape: f32[4,128], index: 0, kind: input, shape index: {}]   ;;  %s1579_s1 = inlined_call_operand.hbm [shape: f32[128,128], index: 1, kind: input, shape index: {}]   ;;  %s1580_s2 = inlined_call_operand.hbm [shape: f32[4,128], index: 2, kind: output, shape index: {}]  }
   0x1   :  { %8 = vsyncpa [#allocation6], 0 }
   0x2   :  { %9 = vsyncpa [#allocation4], 0 }
   0x3   :  { %14 = vsyncadd [#allocation3], 64  ;;  %s1264_s9 = smov [#allocation2]   ;;  %s1192_s13 = scalar_lea.hbm %s1578_s0, 64 }
   0x4   :  { %s15_s10 = sshll.u32 %s1264_s9, 4  ;;  %p1193_p0 = scmp.ne.s32.totalorder %s1578_s0, %s1192_s13  ;;  %s16_s10 = int_to_ptr.vmem [resolvable:$true] %s15_s10 }
   0x5   :  { %p1196_p1 = scmp.lt.u32.totalorder %s1192_s13, %s1578_s0 }
   0x7   :  { %p1198_p2 = pnand %p1196_p1, %p1193_p0 }
   0x9   :  { %1201 = shalt.err (!%p1198_p2)
}
   0xa   :  { %s1202_s18 = scalar_lea.vmem %s16_s10, 64  ;;  %s1206_s19 = scalar_lea.vmem %s16_s10, 128 }
   0xb   :  { %p1203_p3 = scmp.ne.s32.totalorder %s16_s10, %s1202_s18  ;;  %p1207_p4 = scmp.lt.s32.totalorder %s16_s10, %s16_s10 }
   0xc   :  { %p1208_p5 = scmp.lt.s32.totalorder %s1206_s19, %s1202_s18 }
   0xe   :  { %p1209_p6 = por %p1208_p5, %p1207_p4 }
  0x10   :  { %p1210_p7 = pnand %p1209_p6, %p1203_p3 }
  0x12   :  { %1213 = shalt.err (!%p1210_p7)
}
  0x13   :  { %s1265_s20 = smov 64   ;;  %s1266_s21 = smov 4  }
  0x14   :  { %21 = dma.hbm_to_vmem [thread:$0]  %s1578_s0, 64, %s16_s10, [#allocation3], %s1265_s20, %s1265_s20, %s1266_s21  }
  0x15   :  { %s1267_s24 = smov [#allocation5]   ;;  %s1214_s28 = scalar_lea.hbm %s1579_s1, 2048 }
  0x16   :  { %s27_s25 = sshll.u32 %s1267_s24, 4  ;;  %p1215_p8 = scmp.ne.s32.totalorder %s1579_s1, %s1214_s28  ;;  %s28_s25 = int_to_ptr.vmem [resolvable:$true] %s27_s25 }
  0x17   :  { %p1218_p9 = scmp.lt.u32.totalorder %s1214_s28, %s1579_s1 }
  0x19   :  { %p1220_p10 = pnand %p1218_p9, %p1215_p8 }
  0x1b   :  { %1223 = shalt.err (!%p1220_p10)
}
  0x1c   :  { %s1224_s5 = scalar_lea.vmem %s28_s25, 2048  ;;  %p1229_p12 = scmp.lt.s32.totalorder %s28_s25, %s28_s25 }
  0x1d   :  { %p1225_p11 = scmp.ne.s32.totalorder %s28_s25, %s1224_s5  ;;  %p1230_p13 = scmp.lt.s32.totalorder %s1224_s5, %s1224_s5 }
  0x1f   :  { %p1231_p0 = por %p1230_p13, %p1229_p12 }
  0x21   :  { %p1232_p1 = pnand %p1231_p0, %p1225_p11 }
  0x23   :  { %1235 = shalt.err (!%p1232_p1)
}
  0x24   :  { %s1268_s0 = smov 128   ;;  %s1269_s6 = smov 8  }
  0x25   :  { %33 = dma.hbm_to_vmem [thread:$0]  %s1579_s1, 2048, %s28_s25, [#allocation6], %s1268_s0, %s1268_s0, %s1269_s6  }
  0x26   :  { %1258 = dma.done.wait [#allocation3], 128  }
  0x27   :  { %1259 = vsyncadd [#allocation3], 4294967168 }
  0x28   :  { %1260 = dma.done.wait [#allocation6], 2048  }
  0x29   :  { %1261 = vsyncadd [#allocation6], 4294965248  ;;  %v1270_v0 = vmov 0.0|0.0   ;;  %vm1271_vm0 = vmmov 0   ;;  %v1272_v1 = vmov 0.0   ;;  %v41_v2 = vld [vmem:[#allocation5] sm:$0xff] }
  0x2a   :  { %1029 = vmatprep.subr.bf16.mxu1 %v1270_v0  ;;  %1101 = vmatprep.subr.bf16.mxu0 %v1270_v0  ;;  %v42_v3 = vld [vmem:[#allocation5 + $0x8] sm:$0xff]  ;;  %v43_v4 = vld [vmem:[#allocation5 + $0x10] sm:$0xff]  ;;  %v58_v5 = vand.u32 4294901760, %v41_v2  ;;  %v44_v7 = vld [vmem:[#allocation5 + $0x18] sm:$0xff] }
  0x2b   :  { %851 = vmatprep.mubr.msk.f32.mxu1 %vm1271_vm0, %v1272_v1  ;;  %956 = vmatprep.mubr.msk.f32.mxu0 %vm1271_vm0, %v1272_v1  ;;  %v61_v6 = vand.u32 4294901760, %v42_v3  ;;  %v64_v8 = vand.u32 4294901760, %v43_v4  ;;  %v67_v9 = vand.u32 4294901760, %v44_v7  ;;  %v45_v10 = vld [vmem:[#allocation5 + $0x20] sm:$0xff]  ;;  %v46_v11 = vld [vmem:[#allocation5 + $0x28] sm:$0xff]  ;;  %v47_v16 = vld [vmem:[#allocation5 + $0x30] sm:$0xff] }
  0x2c   :  { %v70_v14 = vand.u32 4294901760, %v45_v10  ;;  %v73_v15 = vand.u32 4294901760, %v46_v11  ;;  %v48_v17 = vld [vmem:[#allocation5 + $0x38] sm:$0xff]  ;;  %v76_v19 = vand.u32 4294901760, %v47_v16  ;;  %v1336_v21 = vld [vmem:[#allocation5 + $0x40] sm:$0xff]  ;;  %v1338_v22 = vld [vmem:[#allocation5 + $0x48] sm:$0xff]  ;;  %v1352_v29 = vsub.f32 %v41_v2, %v58_v5 }
  0x2d   :  { %v1322_v12 = vpack.c.bf16 %v61_v6, %v58_v5  ;;  %v1326_v13 = vpack.c.bf16 %v67_v9, %v64_v8  ;;  %v79_v20 = vand.u32 4294901760, %v48_v17  ;;  %v82_v24 = vand.u32 4294901760, %v1336_v21  ;;  %v40_v26 = vld [vmem:[#allocation2] sm:$0xff]  ;;  %v1348_v27 = vld [vmem:[#allocation5 + $0x50] sm:$0xff]  ;;  %v1364_v35 = vld [vmem:[#allocation5 + $0x60] sm:$0xff] }
  0x2e   :  { %v1332_v18 = vpack.c.bf16 %v73_v15, %v70_v14  ;;  %v85_v25 = vand.u32 4294901760, %v1338_v22  ;;  %v1350_v28 = vld [vmem:[#allocation5 + $0x58] sm:$0xff]  ;;  %v1354_v30 = vand.u32 4294901760, %v40_v26  ;;  %v1356_v31 = vsub.f32 %v42_v3, %v61_v6  ;;  %v1368_v36 = vld [vmem:[#allocation5 + $0x68] sm:$0xff]  ;;  %v1387_v43 = vld [vmem:[#allocation5 + $0x70] sm:$0xff] }
  0x2f   :  { %1031 = vmatpush3.bf16.msra.mxu1 %v1322_v12  ;;  %1103 = vmatpush3.bf16.msra.mxu0 %v1322_v12  ;;  %v1342_v23 = vpack.c.bf16 %v79_v20, %v76_v19  ;;  %v88_v33 = vand.u32 4294901760, %v1348_v27  ;;  %v91_v34 = vand.u32 4294901760, %v1350_v28  ;;  %v1370_v37 = vsub.f32 %v43_v4, %v64_v8  ;;  %v1389_v44 = vld [vmem:[#allocation5 + $0x78] sm:$0xff] }
  0x30   :  { %1032 = vmatprep.subr.bf16.mxu1 %v1270_v0  ;;  %1104 = vmatprep.subr.bf16.mxu0 %v1270_v0  ;;  %v1360_v32 = vpack.c.bf16 %v85_v25, %v82_v24  ;;  %v1372_v38 = vsub.f32 %v44_v7, %v67_v9  ;;  %v94_v39 = vand.u32 4294901760, %v1364_v35  ;;  %v1376_v40 = vsub.f32 %v40_v26, %v1354_v30 }
  0x31   :  { %v1384_v41 = vpack.c.bf16 %v91_v34, %v88_v33  ;;  %v97_v42 = vand.u32 4294901760, %v1368_v36  ;;  %v151_v45 = vand.u32 4294901760, %v1352_v29  ;;  %v158_v46 = vand.u32 4294901760, %v1356_v31 }
  0x32   :  { %v1395_v47 = vsub.f32 %v45_v10, %v70_v14  ;;  %v1397_v48 = vsub.f32 %v46_v11, %v73_v15  ;;  %v100_v49 = vand.u32 4294901760, %v1387_v43  ;;  %v103_v50 = vand.u32 4294901760, %v1389_v44 }
  0x33   :  { %1034 = vmatpush3.bf16.msra.mxu1 %v1326_v13  ;;  %1106 = vmatpush3.bf16.msra.mxu0 %v1326_v13  ;;  %v140_v51 = vand.u32 4294901760, %v1376_v40  ;;  %v165_v52 = vand.u32 4294901760, %v1370_v37  ;;  %v1409_v53 = vpack.c.bf16 %v97_v42, %v94_v39  ;;  %v152_v54 = vsub.f32 %v1352_v29, %v151_v45 }
  0x34   :  { %1035 = vmatprep.subr.bf16.mxu1 %v1270_v0  ;;  %1107 = vmatprep.subr.bf16.mxu0 %v1270_v0  ;;  %v159_v55 = vsub.f32 %v1356_v31, %v158_v46  ;;  %v172_v56 = vand.u32 4294901760, %v1372_v38  ;;  %v1416_v57 = vsub.f32 %v47_v16, %v76_v19  ;;  %v1418_v58 = vsub.f32 %v48_v17, %v79_v20 }
  0x35   :  { %v141_v59 = vsub.f32 %v1376_v40, %v140_v51  ;;  %v166_v60 = vsub.f32 %v1370_v37, %v165_v52  ;;  %v179_v61 = vand.u32 4294901760, %v1395_v47  ;;  %v186_v62 = vand.u32 4294901760, %v1397_v48 }
  0x36   :  { %v1430_v63 = vpack.c.bf16 %v103_v50, %v100_v49  ;;  %v153_v2 = vand.u32 4294901760, %v152_v54  ;;  %v160_v3 = vand.u32 4294901760, %v159_v55  ;;  %v173_v4 = vsub.f32 %v1372_v38, %v172_v56 }
  0x37   :  { %1037 = vmatpush3.bf16.msra.mxu1 %v1332_v18  ;;  %1109 = vmatpush3.bf16.msra.mxu0 %v1332_v18  ;;  %v1436_v5 = vsub.f32 %v1336_v21, %v82_v24  ;;  %v1439_v6 = vsub.f32 %v1338_v22, %v85_v25  ;;  %v1126_v7 = vpack.c.bf16 %v158_v46, %v151_v45  ;;  %v142_v8 = vand.u32 4294901760, %v141_v59 }
  0x38   :  { %1038 = vmatprep.subr.bf16.mxu1 %v1270_v0  ;;  %1110 = vmatprep.subr.bf16.mxu0 %v1270_v0  ;;  %v167_v9 = vand.u32 4294901760, %v166_v60  ;;  %v180_v10 = vsub.f32 %v1395_v47, %v179_v61  ;;  %v187_v11 = vsub.f32 %v1397_v48, %v186_v62  ;;  %v1054_v14 = vpack.c.bf16 %v160_v3, %v153_v2 }
  0x39   :  { %v174_v15 = vand.u32 4294901760, %v173_v4  ;;  %v193_v16 = vand.u32 4294901760, %v1416_v57  ;;  %v200_v17 = vand.u32 4294901760, %v1418_v58  ;;  %v1452_v19 = vsub.f32 %v1348_v27, %v88_v33 }
  0x3a   :  { %v1457_v20 = vsub.f32 %v1350_v28, %v91_v34  ;;  %v1129_v21 = vpack.c.bf16 %v172_v56, %v165_v52  ;;  %v181_v22 = vand.u32 4294901760, %v180_v10  ;;  %v188_v24 = vand.u32 4294901760, %v187_v11 }
  0x3b   :  { %1040 = vmatpush3.bf16.msra.mxu1 %v1342_v23  ;;  %1112 = vmatpush3.bf16.msra.mxu0 %v1342_v23  ;;  %v207_v25 = vand.u32 4294901760, %v1436_v5  ;;  %v1057_v26 = vpack.c.bf16 %v174_v15, %v167_v9  ;;  %v194_v45 = vsub.f32 %v1416_v57, %v193_v16  ;;  %v201_v27 = vsub.f32 %v1418_v58, %v200_v17 }
  0x3c   :  { %1041 = vmatprep.subr.bf16.mxu1 %v1270_v0  ;;  %1113 = vmatprep.subr.bf16.mxu0 %v1270_v0  ;;  %v214_v33 = vand.u32 4294901760, %v1439_v6  ;;  %v1468_v28 = vsub.f32 %v1364_v35, %v94_v39  ;;  %v1473_v34 = vsub.f32 %v1368_v36, %v97_v42  ;;  %v1060_v46 = vpack.c.bf16 %v188_v24, %v181_v22 }
  0x3d   :  { %v208_v52 = vsub.f32 %v1436_v5, %v207_v25  ;;  %v221_v54 = vand.u32 4294901760, %v1452_v19  ;;  %v195_v35 = vand.u32 4294901760, %v194_v45  ;;  %v202_v39 = vand.u32 4294901760, %v201_v27 }
  0x3e   :  { %v215_v55 = vsub.f32 %v1439_v6, %v214_v33  ;;  %v228_v36 = vand.u32 4294901760, %v1457_v20  ;;  %v1488_v42 = vsub.f32 %v1387_v43, %v100_v49  ;;  %v1493_v56 = vsub.f32 %v1389_v44, %v103_v50 }
  0x3f   :  { %1043 = vmatpush3.bf16.msra.mxu1 %v1360_v32  ;;  %1115 = vmatpush3.bf16.msra.mxu0 %v1360_v32  ;;  %v1135_v59 = vpack.c.bf16 %v200_v17, %v193_v16  ;;  %v209_v60 = vand.u32 4294901760, %v208_v52  ;;  %v1063_v2 = vpack.c.bf16 %v202_v39, %v195_v35  ;;  %v242_v43 = vand.u32 4294901760, %v1473_v34 }
  0x40   :  { %1044 = vmatprep.subr.bf16.mxu1 %v1270_v0  ;;  %1116 = vmatprep.subr.bf16.mxu0 %v1270_v0  ;;  %v216_v3 = vand.u32 4294901760, %v215_v55  ;;  %v229_v4 = vsub.f32 %v1457_v20, %v228_v36  ;;  %v1138_v44 = vpack.c.bf16 %v214_v33, %v207_v25  ;;  %v256_v11 = vand.u32 4294901760, %v1493_v56 }
  0x41   :  { %v243_v10 = vsub.f32 %v1473_v34, %v242_v43 }
  0x42   :  { %v230_v9 = vand.u32 4294901760, %v229_v4  ;;  %v257_v22 = vsub.f32 %v1493_v56, %v256_v11 }
  0x43   :  { %1046 = vmatpush3.bf16.msra.mxu1 %v1384_v41  ;;  %1118 = vmatpush3.bf16.msra.mxu0 %v1384_v41  ;;  %v244_v17 = vand.u32 4294901760, %v243_v10 }
  0x44   :  { %1047 = vmatprep.subr.bf16.mxu1 %v1270_v0  ;;  %1119 = vmatprep.subr.bf16.mxu0 %v1270_v0  ;;  %v258_v45 = vand.u32 4294901760, %v257_v22 }
  0x47   :  { %1049 = vmatpush3.bf16.msra.mxu1 %v1409_v53  ;;  %1121 = vmatpush3.bf16.msra.mxu0 %v1409_v53 }
  0x48   :  { %1050 = vmatprep.subr.bf16.mxu1 %v1270_v0  ;;  %1122 = vmatprep.subr.bf16.mxu0 %v1270_v0 }
  0x4b   :  { %1052 = vmatpush3.bf16.msra.mxu1 %v1430_v63  ;;  %1124 = vmatpush3.bf16.msra.mxu0 %v1430_v63 }
  0x4c   :  { %1053 = vmatprep.subr.bf16.mxu1 %v1270_v0  ;;  %1125 = vmatprep.subr.bf16.mxu0 %v1270_v0 }
  0x4e   :  { %852 = vmatmul.mubr.f32.vlgmr.msra.gmra.mrb[0].mxu1 %v142_v8  ;;  %957 = vmatmul.mubr.f32.vlgmr.msra.gmra.mrb[0].mxu0 %v140_v51  ;;  %v1132_v51 = vpack.c.bf16 %v186_v62, %v179_v61  ;;  %v222_v61 = vsub.f32 %v1452_v19, %v221_v54  ;;  %v235_v62 = vand.u32 4294901760, %v1468_v28  ;;  %v1066_v8 = vpack.c.bf16 %v216_v3, %v209_v60 }
  0x4f   :  { %1055 = vmatpush3.bf16.msra.mxu1 %v1054_v14  ;;  %1127 = vmatpush3.bf16.msra.mxu0 %v1126_v7  ;;  %v249_v7 = vand.u32 4294901760, %v1488_v42  ;;  %v1141_v14 = vpack.c.bf16 %v228_v36, %v221_v54 }
  0x50   :  { %1056 = vmatprep.subr.bf16.mxu1 %v1270_v0  ;;  %1128 = vmatprep.subr.bf16.mxu0 %v1270_v0  ;;  %v223_v49 = vand.u32 4294901760, %v222_v61  ;;  %v236_v50 = vsub.f32 %v1468_v28, %v235_v62  ;;  %v1144_v25 = vpack.c.bf16 %v242_v43, %v235_v62 }
  0x51   :  { %886 = vmatprep.mubr.msk.f32.mxu1 %vm1271_vm0, %v1272_v1  ;;  %991 = vmatprep.mubr.msk.f32.mxu0 %vm1271_vm0, %v1272_v1  ;;  %v1147_v33 = vpack.c.bf16 %v256_v11, %v249_v7 }
  0x52   :  { %v237_v15 = vand.u32 4294901760, %v236_v50  ;;  %v1069_v16 = vpack.c.bf16 %v230_v9, %v223_v49 }
  0x53   :  { %1058 = vmatpush3.bf16.msra.mxu1 %v1057_v26  ;;  %1130 = vmatpush3.bf16.msra.mxu0 %v1129_v21  ;;  %v250_v21 = vsub.f32 %v1488_v42, %v249_v7 }
  0x54   :  { %1059 = vmatprep.subr.bf16.mxu1 %v1270_v0  ;;  %1131 = vmatprep.subr.bf16.mxu0 %v1270_v0  ;;  %v1072_v24 = vpack.c.bf16 %v244_v17, %v237_v15 }
  0x55   :  { %v251_v26 = vand.u32 4294901760, %v250_v21 }
  0x57   :  { %1061 = vmatpush3.bf16.msra.mxu1 %v1060_v46  ;;  %1133 = vmatpush3.bf16.msra.mxu0 %v1132_v51  ;;  %v1075_v27 = vpack.c.bf16 %v258_v45, %v251_v26  ;;  %v1078_v46 = vpack.c.bf16 %v1356_v31, %v1352_v29  ;;  %v1081_v51 = vpack.c.bf16 %v1372_v38, %v1370_v37 }
  0x58   :  { %1062 = vmatprep.subr.bf16.mxu1 %v1270_v0  ;;  %1134 = vmatprep.subr.bf16.mxu0 %v1270_v0  ;;  %v1084_v29 = vpack.c.bf16 %v1397_v48, %v1395_v47 }
  0x5b   :  { %1064 = vmatpush3.bf16.msra.mxu1 %v1063_v2  ;;  %1136 = vmatpush3.bf16.msra.mxu0 %v1135_v59 }
  0x5c   :  { %1065 = vmatprep.subr.bf16.mxu1 %v1270_v0  ;;  %1137 = vmatprep.subr.bf16.mxu0 %v1270_v0 }
  0x5f   :  { %1067 = vmatpush3.bf16.msra.mxu1 %v1066_v8  ;;  %1139 = vmatpush3.bf16.msra.mxu0 %v1138_v44 }
  0x60   :  { %1068 = vmatprep.subr.bf16.mxu1 %v1270_v0  ;;  %1140 = vmatprep.subr.bf16.mxu0 %v1270_v0 }
  0x63   :  { %1070 = vmatpush3.bf16.msra.mxu1 %v1069_v16  ;;  %1142 = vmatpush3.bf16.msra.mxu0 %v1141_v14 }
  0x64   :  { %1071 = vmatprep.subr.bf16.mxu1 %v1270_v0  ;;  %1143 = vmatprep.subr.bf16.mxu0 %v1270_v0 }
  0x67   :  { %1073 = vmatpush3.bf16.msra.mxu1 %v1072_v24  ;;  %1145 = vmatpush3.bf16.msra.mxu0 %v1144_v25 }
  0x68   :  { %1074 = vmatprep.subr.bf16.mxu1 %v1270_v0  ;;  %1146 = vmatprep.subr.bf16.mxu0 %v1270_v0 }
  0x6b   :  { %1076 = vmatpush3.bf16.msra.mxu1 %v1075_v27  ;;  %1148 = vmatpush3.bf16.msra.mxu0 %v1147_v33 }
  0x6c   :  { %1077 = vmatprep.subr.bf16.mxu1 %v1270_v0  ;;  %1149 = vmatprep.subr.bf16.mxu0 %v1270_v0 }
  0x6e   :  { %887 = vmatmul.mubr.f32.vlgmr.msra.gmra.mrb[0].mxu1 %v1354_v30  ;;  %992 = vmatmul.mubr.f32.vlgmr.msra.gmra.mrb[0].mxu0 %v1354_v30 }
  0x6f   :  { %1079 = vmatpush3.bf16.msra.mxu1 %v1078_v46  ;;  %1151 = vmatpush3.bf16.msra.mxu0 %v1322_v12  ;;  %v1087_v12 = vpack.c.bf16 %v1418_v58, %v1416_v57 }
  0x70   :  { %1080 = vmatprep.subr.bf16.mxu1 %v1270_v0  ;;  %1152 = vmatprep.subr.bf16.mxu0 %v1270_v0 }
  0x71   :  { %921 = vmatprep.mubr.msk.f32.mxu1 %vm1271_vm0, %v1272_v1  ;;  %1026 = vmatprep.mubr.msk.f32.mxu0 %vm1271_vm0, %v1272_v1  ;;  %v1090_v1 = vpack.c.bf16 %v1439_v6, %v1436_v5 }
  0x73   :  { %1082 = vmatpush3.bf16.msra.mxu1 %v1081_v51  ;;  %1154 = vmatpush3.bf16.msra.mxu0 %v1326_v13  ;;  %v1093_v13 = vpack.c.bf16 %v1457_v20, %v1452_v19 }
  0x74   :  { %1083 = vmatprep.subr.bf16.mxu1 %v1270_v0  ;;  %1155 = vmatprep.subr.bf16.mxu0 %v1270_v0 }
  0x77   :  { %1085 = vmatpush3.bf16.msra.mxu1 %v1084_v29  ;;  %1157 = vmatpush3.bf16.msra.mxu0 %v1332_v18  ;;  %v1096_v18 = vpack.c.bf16 %v1473_v34, %v1468_v28 }
  0x78   :  { %1086 = vmatprep.subr.bf16.mxu1 %v1270_v0  ;;  %1158 = vmatprep.subr.bf16.mxu0 %v1270_v0 }
  0x7b   :  { %1088 = vmatpush3.bf16.msra.mxu1 %v1087_v12  ;;  %1160 = vmatpush3.bf16.msra.mxu0 %v1342_v23  ;;  %v1099_v23 = vpack.c.bf16 %v1493_v56, %v1488_v42 }
  0x7c   :  { %1089 = vmatprep.subr.bf16.mxu1 %v1270_v0  ;;  %1161 = vmatprep.subr.bf16.mxu0 %v1270_v0 }
  0x7f   :  { %1091 = vmatpush3.bf16.msra.mxu1 %v1090_v1  ;;  %1163 = vmatpush3.bf16.msra.mxu0 %v1360_v32 }
  0x80   :  { %1092 = vmatprep.subr.bf16.mxu1 %v1270_v0  ;;  %1164 = vmatprep.subr.bf16.mxu0 %v1270_v0 }
  0x83   :  { %1094 = vmatpush3.bf16.msra.mxu1 %v1093_v13  ;;  %1166 = vmatpush3.bf16.msra.mxu0 %v1384_v41 }
  0x84   :  { %1095 = vmatprep.subr.bf16.mxu1 %v1270_v0  ;;  %1167 = vmatprep.subr.bf16.mxu0 %v1270_v0 }
  0x87   :  { %1097 = vmatpush3.bf16.msra.mxu1 %v1096_v18  ;;  %1169 = vmatpush3.bf16.msra.mxu0 %v1409_v53 }
  0x88   :  { %1098 = vmatprep.subr.bf16.mxu1 %v1270_v0  ;;  %1170 = vmatprep.subr.bf16.mxu0 %v1270_v0 }
  0x8b   :  { %1100 = vmatpush3.bf16.msra.mxu1 %v1099_v23  ;;  %1172 = vmatpush3.bf16.msra.mxu0 %v1430_v63 }
  0x8e   :  { %922 = vmatmul.mubr.f32.vlgmr.msra.gmra.mrb[0].mxu1 %v1376_v40  ;;  %1027 = vmatmul.mubr.f32.vlgmr.msra.gmra.mrb[0].mxu0 %v1354_v30 }
 0x161   :  { %v399_v31 = vpop.f32.mrb[0].mxu1  ;;  %v694_v32 = vpop.f32.mrb[0].mxu0 }
 0x162   :  { %v1173_v37 = vadd.f32 %v694_v32, %v399_v31  ;;  %v923_v38 = vpop.f32.mrb[1].mxu1  ;;  %v1028_v41 = vpop.f32.mrb[1].mxu0 }
 0x164   :  { %698 = vst [vmem:[#allocation7] sm:$0xff] %v1173_v37 }
 0x165   :  { %703 = vsyncadd [#allocation4], 64  ;;  %s1273_s1 = smov [#allocation7]  }
 0x166   :  { %s704_s9 = sshll.u32 %s1273_s1, 4  ;;  %s705_s9 = int_to_ptr.vmem [resolvable:$true] %s704_s9 }
 0x167   :  { %s1236_s10 = scalar_lea.vmem %s705_s9, 64  ;;  %s1240_s11 = scalar_lea.vmem %s705_s9, 128 }
 0x168   :  { %p1237_p2 = scmp.ne.s32.totalorder %s705_s9, %s1236_s10  ;;  %p1241_p3 = scmp.lt.s32.totalorder %s705_s9, %s705_s9 }
 0x169   :  { %p1242_p4 = scmp.lt.s32.totalorder %s1240_s11, %s1236_s10 }
 0x16b   :  { %p1243_p5 = por %p1242_p4, %p1241_p3 }
 0x16d   :  { %p1244_p6 = pnand %p1243_p5, %p1237_p2 }
 0x16f   :  { %1247 = shalt.err (!%p1244_p6)
}
 0x170   :  { %s1248_s14 = scalar_lea.hbm %s1580_s2, 64 }
 0x171   :  { %p1249_p7 = scmp.ne.s32.totalorder %s1580_s2, %s1248_s14  ;;  %p1252_p8 = scmp.lt.u32.totalorder %s1248_s14, %s1580_s2 }
 0x173   :  { %p1254_p9 = pnand %p1252_p8, %p1249_p7 }
 0x175   :  { %1257 = shalt.err (!%p1254_p9)
}
 0x176   :  { %710 = dma.vmem_to_hbm [thread:$0]  %s705_s9, 64, %s1580_s2, [#allocation4], %s1265_s20, %s1265_s20, %s1266_s21  }
 0x177   :  { %1262 = dma.done.wait [#allocation4], 128  }
 0x178   :  { %1263 = vsyncadd [#allocation4], 4294967168 }
 0x179   :  { %714 = vsyncpa [#allocation3], 1 }
 0x17a   :  { %715 = vsyncpa [#allocation6], 1 }
 0x17b   :  { %716 = vsyncpa [#allocation4], 1 }

</bundles_post_ra>
